<compile_context>
chip_gen: v5e
topology: v5e:2x2
jax: 0.10.0
libtpu: 0.0.40
codegen_flags: <defaults>
</compile_context>

<pallas_src>
import functools
import math

import jax
import jax.numpy as jnp
from jax.experimental import pallas as pl
from jax.experimental.pallas import tpu as pltpu


def _round_up(x, m):
    return (x + m - 1) // m * m


# ---------------------------------------------------------------------------
# Kernel 1: QKV dense projection  y = x @ W + b   (bf16 MXU, f32 accumulation)
#   x: [N_tokens, K]   W: [K, H_out] (bf16, transposed nn.Linear weight)   b: [H_out]
# ---------------------------------------------------------------------------
def _dense_kernel(x_ref, w_ref, b_ref, o_ref):
    x = x_ref[...].astype(jnp.bfloat16)
    w = w_ref[...].astype(jnp.bfloat16)
    y = jnp.dot(x, w, preferred_element_type=jnp.float32)
    o_ref[...] = (y + b_ref[...]).astype(o_ref.dtype)


def dense_bias(x, w, b, *, out_dtype=None, tm_max=256, tn_max=512,
               w_resident_budget=24 * 1024 * 1024):
    """Row-tiled dense matmul with bias.

    If the whole weight fits a VMEM budget it is kept resident (constant block index
    -> fetched once); otherwise fall back to column tiles with columns on the OUTER
    grid axis so each weight slab is still DMA'd only once.
    """
    n, k = x.shape
    h_out = w.shape[1]
    out_dtype = out_dtype if out_dtype is not None else x.dtype

    tm = tm_max if n >= tm_max else _round_up(max(n, 8), 8)
    n_pad = _round_up(n, tm)
    if n_pad != n:
        x = jnp.pad(x, ((0, n_pad - n), (0, 0)))

    b2 = b.reshape(1, h_out).astype(jnp.float32)
    w_bytes = k * h_out * w.dtype.itemsize

    if w_bytes <= w_resident_budget:
        # Whole weight resident in VMEM; grid only over token-row tiles.
        grid = (n_pad // tm,)
        in_specs = [
            pl.BlockSpec((tm, k), lambda i: (i, 0)),
            pl.BlockSpec((k, h_out), lambda i: (0, 0)),   # constant index -> fetched once
            pl.BlockSpec((1, h_out), lambda i: (0, 0)),
        ]
        out_specs = pl.BlockSpec((tm, h_out), lambda i: (i, 0))
        dims = ("parallel",)
    else:
        # Column-tiled fallback: columns OUTER so each W column slab is DMA'd once,
        # only the (much smaller) activations are re-streamed.
        tn = h_out
        for cand in range(tn_max, 127, -128):           # multiples of 128 that divide h_out
            if h_out % cand == 0:
                tn = cand
                break
        grid = (h_out // tn, n_pad // tm)
        in_specs = [
            pl.BlockSpec((tm, k), lambda j, i: (i, 0)),
            pl.BlockSpec((k, tn), lambda j, i: (0, j)),
            pl.BlockSpec((1, tn), lambda j, i: (0, j)),
        ]
        out_specs = pl.BlockSpec((tm, tn), lambda j, i: (i, j))
        dims = ("parallel", "parallel")

    out = pl.pallas_call(
        _dense_kernel,
        out_shape=jax.ShapeDtypeStruct((n_pad, h_out), out_dtype),
        grid_spec=pltpu.PrefetchScalarGridSpec(
            num_scalar_prefetch=0, grid=grid,
            in_specs=in_specs, out_specs=out_specs),
        compiler_params=pltpu.CompilerParams(
            dimension_semantics=dims,
            vmem_limit_bytes=48 * 1024 * 1024),
    )(x, w, b2)
    return out[:n]


# ---------------------------------------------------------------------------
# Kernel 2: flash attention with in-kernel (ALiBi + key-padding) bias.
#   q,k,v    : (B, S_pad, H*D)  bf16, natural layout (no transposes)
#   slopes   : (H,) f32 in SMEM
#   key_bias : (B, 1, S_pad) f32 additive -10000 on padded key columns
#   out      : (B, S_pad, H*D)
# Grid = (B, head_groups, q_tiles, kv_tiles); kv axis is the online-softmax
# accumulator axis.
# ---------------------------------------------------------------------------
def _flash_attn_kernel(slopes_ref, q_ref, k_ref, v_ref, kbias_ref, o_ref,
                       m_sc, l_sc, acc_sc, *, sm_scale, heads_per_block):
    hg = pl.program_id(1)
    qi = pl.program_id(2)
    ki = pl.program_id(3)

    tq = q_ref.shape[1]
    tkv = k_ref.shape[1]
    hb = heads_per_block
    d = q_ref.shape[2] // hb

    @pl.when(ki == 0)
    def _init():
        m_sc[...] = jnp.full_like(m_sc, -jnp.inf)
        l_sc[...] = jnp.zeros_like(l_sc)
        acc_sc[...] = jnp.zeros_like(acc_sc)

    q = q_ref[0]                                    # (tq,  hb*d) bf16
    k = k_ref[0]                                    # (tkv, hb*d) bf16
    v = v_ref[0]                                    # (tkv, hb*d) bf16
    key_bias = kbias_ref[0]                         # (1, tkv) f32

    # Head-independent ALiBi distance term: -(|q_pos - k_pos|), f32.
    q_pos = qi * tq + jax.lax.broadcasted_iota(jnp.int32, (tq, tkv), 0)
    k_pos = ki * tkv + jax.lax.broadcasted_iota(jnp.int32, (tq, tkv), 1)
    neg_dist = -jnp.abs(q_pos - k_pos).astype(jnp.float32)

    for i in range(hb):                             # static unroll over heads in the block
        slope = slopes_ref[hg * hb + i]             # scalar f32 from SMEM
        qh = q[:, i * d:(i + 1) * d]
        kh = k[:, i * d:(i + 1) * d]
        vh = v[:, i * d:(i + 1) * d]

        # scores = (q @ k^T) * scale + slope * (-|i-j|) + key_padding_bias, all f32.
        s = jax.lax.dot_general(qh, kh, (((1,), (1,)), ((), ())),
                                preferred_element_type=jnp.float32)
        s = s * sm_scale + slope * neg_dist + key_bias

        m_prev = m_sc[:, i:i + 1]                   # (tq, 1)
        m_new = jnp.maximum(m_prev, s.max(axis=-1, keepdims=True))
        alpha = jnp.exp(m_prev - m_new)
        p = jnp.exp(s - m_new)                      # f32 softmax math (v5e-safe)
        l_sc[:, i:i + 1] = alpha * l_sc[:, i:i + 1] + p.sum(axis=-1, keepdims=True)
        acc_sc[:, i * d:(i + 1) * d] = (
            alpha * acc_sc[:, i * d:(i + 1) * d]
            + jnp.dot(p.astype(v.dtype), vh, preferred_element_type=jnp.float32))
        m_sc[:, i:i + 1] = m_new

    @pl.when(ki == pl.num_programs(3) - 1)
    def _finish():
        # Guard fully-masked / all-padding query rows (l == 0) against NaN/Inf.
        inv = pl.reciprocal(jnp.maximum(l_sc[...], 1e-30), approx=True)   # (tq, hb)
        for i in range(hb):
            o_ref[0, :, i * d:(i + 1) * d] = (
                acc_sc[:, i * d:(i + 1) * d] * inv[:, i:i + 1]
            ).astype(o_ref.dtype)


def _choose_heads_per_block(num_heads, head_dim):
    """Smallest divisor of H whose slab (Hb*D) is a multiple of 128 lanes; else all heads."""
    for cand in range(1, num_heads + 1):
        if num_heads % cand == 0 and (cand * head_dim) % 128 == 0:
            return cand
    return num_heads


def _choose_seq_tiles(seqlen):
    """Padded sequence length and (tq, tkv) tiles. 256-wide tiles for long sequences."""
    if seqlen <= 128:
        s_pad = _round_up(max(seqlen, 8), 8)
        return s_pad, s_pad, s_pad
    s_pad = _round_up(seqlen, 128)
    tile = 256 if s_pad % 256 == 0 else 128
    return s_pad, tile, tile


def alibi_flash_attention(q, k, v, key_bias, slopes, *, sm_scale, num_heads,
                          head_dim, tq, tkv, out_dtype):
    batch, s_pad, dim = q.shape
    hb = _choose_heads_per_block(num_heads, head_dim)
    n_hg = num_heads // hb

    grid = (batch, n_hg, s_pad // tq, s_pad // tkv)
    kernel = functools.partial(_flash_attn_kernel, sm_scale=sm_scale,
                               heads_per_block=hb)
    return pl.pallas_call(
        kernel,
        out_shape=jax.ShapeDtypeStruct((batch, s_pad, dim), out_dtype),
        grid_spec=pltpu.PrefetchScalarGridSpec(
            num_scalar_prefetch=0,
            grid=grid,
            in_specs=[
                pl.BlockSpec(memory_space=pltpu.MemorySpace.SMEM),           # slopes (H,)
                pl.BlockSpec((1, tq, hb * head_dim),
                             lambda b, hg, qi, ki: (b, qi, hg)),             # q
                pl.BlockSpec((1, tkv, hb * head_dim),
                             lambda b, hg, qi, ki: (b, ki, hg)),             # k
                pl.BlockSpec((1, tkv, hb * head_dim),
                             lambda b, hg, qi, ki: (b, ki, hg)),             # v
                pl.BlockSpec((1, 1, tkv),
                             lambda b, hg, qi, ki: (b, 0, ki)),              # key padding bias
            ],
            out_specs=pl.BlockSpec((1, tq, hb * head_dim),
                                   lambda b, hg, qi, ki: (b, qi, hg)),
            scratch_shapes=[
                pltpu.VMEM((tq, hb), jnp.float32),              # running max m
                pltpu.VMEM((tq, hb), jnp.float32),              # running denom l
                pltpu.VMEM((tq, hb * head_dim), jnp.float32),   # running numerator acc
            ],
        ),
        compiler_params=pltpu.CompilerParams(
            dimension_semantics=("parallel", "parallel", "parallel", "arbitrary")),
    )(slopes, q, k, v, key_bias)


# ---------------------------------------------------------------------------
# Forward pass of BertAlibiUnpadSelfAttention (vanilla, non-FA2 path).
# ---------------------------------------------------------------------------
def bert_alibi_unpad_self_attention(hidden_states, cu_seqlens, max_seqlen,
                                    indices, attn_mask, bias, slopes, *,
                                    wqkv_weight, wqkv_bias, num_heads):
    """hidden_states: (total_nnz, dim) unpadded tokens -> (total_nnz, dim).

    TODO(synk): the precomputed (B,H,S,S) `bias` is NOT streamed; the ALiBi + key-padding
    bias is recomputed in-kernel from `slopes` and `attn_mask` (the standard MosaicBERT
    construction bias = -slope*|i-j| + (1-mask)*-10000) to avoid the O(B*H*S^2) HBM stream.
    TODO(synk): attention-probs dropout omitted (inference / p_dropout == 0).
    TODO(synk): per-batch (batch, heads) ALiBi slopes are not supported; only (heads,).
    """
    n_tok, dim = hidden_states.shape
    head_dim = dim // num_heads
    batch = attn_mask.shape[0]
    seqlen = max_seqlen
    del cu_seqlens, bias  # consumed only by the FA2 / precomputed-bias paths

    # 1) QKV projection on the unpadded tokens (bf16 MXU, weight resident in VMEM).
    w_bf16 = wqkv_weight.astype(jnp.bfloat16)
    qkv = dense_bias(hidden_states, w_bf16, wqkv_bias,
                     out_dtype=jnp.bfloat16)                    # (n_tok, 3*dim) bf16

    # 2) pad_input: scatter tokens directly into the (B, S_pad, dim) padded layout
    #    (no separate jnp.pad pass; indices are remapped when S_pad != S).
    s_pad, tq, tkv = _choose_seq_tiles(seqlen)
    if s_pad != seqlen:
        b_idx = indices // seqlen
        s_idx = indices - b_idx * seqlen
        indices_p = b_idx * s_pad + s_idx
    else:
        indices_p = indices

    def scatter(vals):
        buf = jnp.zeros((batch * s_pad, dim), vals.dtype).at[indices_p].set(vals)
        return buf.reshape(batch, s_pad, dim)

    q = scatter(qkv[:, 0 * dim:1 * dim])                        # (B, S_pad, H*D) bf16
    k = scatter(qkv[:, 1 * dim:2 * dim])
    v = scatter(qkv[:, 2 * dim:3 * dim])

    # Tiny (B, 1, S_pad) additive key-padding bias (the -10000 mask term).
    maskf = attn_mask.astype(jnp.float32)
    if s_pad != seqlen:
        maskf = jnp.pad(maskf, ((0, 0), (0, s_pad - seqlen)))
    key_bias = ((1.0 - maskf) * -10000.0).reshape(batch, 1, s_pad)

    slopes_1d = jnp.asarray(slopes, jnp.float32).reshape(-1)[:num_heads]

    # 3) attention (ALiBi computed in-kernel).
    sm_scale = 1.0 / math.sqrt(head_dim)
    ctx = alibi_flash_attention(q, k, v, key_bias, slopes_1d,
                                sm_scale=sm_scale, num_heads=num_heads,
                                head_dim=head_dim, tq=tq, tkv=tkv,
                                out_dtype=hidden_states.dtype)   # (B, S_pad, dim)

    # 4) unpad_input_only: gather the valid tokens back out.
    return ctx.reshape(batch * s_pad, dim)[indices_p]


if __name__ == "__main__":
    key = jax.random.PRNGKey(0)
    ks = jax.random.split(key, 3)

    batch, seqlen, num_heads, head_dim = 2, 8, 4, 8
    dim = num_heads * head_dim                                   # hidden_size = 32
    seq_lens = jnp.array([8, 5], dtype=jnp.int32)                # ragged batch

    attn_mask = (jnp.arange(seqlen)[None, :] < seq_lens[:, None]).astype(jnp.int32)
    indices = jnp.nonzero(attn_mask.reshape(-1))[0].astype(jnp.int32)
    cu_seqlens = jnp.concatenate(
        [jnp.zeros((1,), jnp.int32), jnp.cumsum(seq_lens)]).astype(jnp.int32)
    total_nnz = int(indices.shape[0])

    hidden_states = jax.random.normal(ks[0], (total_nnz, dim), jnp.float32)

    # Wqkv parameters, stored as [in, out] (transposed nn.Linear weight).
    wqkv_weight = jax.random.normal(ks[1], (dim, 3 * dim), jnp.float32) * 0.05
    wqkv_bias = jax.random.normal(ks[2], (3 * dim,), jnp.float32) * 0.05

    # ALiBi slopes + the precomputed bias the PyTorch vanilla path would consume
    # (used here only by the pure-JAX reference; the kernel rebuilds it in-kernel).
    slopes = jnp.array([2.0 ** (-(h + 1)) for h in range(num_heads)], jnp.float32)
    pos = jnp.arange(seqlen)
    rel = -jnp.abs(pos[None, :] - pos[:, None]).astype(jnp.float32)        # (S, S)
    alibi = slopes[:, None, None] * rel[None, :, :]                        # (H, S, S)
    mask_bias = (1.0 - attn_mask.astype(jnp.float32))[:, None, None, :] * -10000.0
    bias = alibi[None] + mask_bias                                         # (B, H, S, S)

    out = bert_alibi_unpad_self_attention(
        hidden_states, cu_seqlens, seqlen, indices, attn_mask, bias, slopes,
        wqkv_weight=wqkv_weight, wqkv_bias=wqkv_bias, num_heads=num_heads)
    out = jax.block_until_ready(out)

    # ---------------- pure-JAX reference (mirrors PyTorch vanilla path, f32) ------------
    hp = jax.lax.Precision.HIGHEST
    qkv_ref = jnp.einsum("nk,kh->nh", hidden_states, wqkv_weight, precision=hp) + wqkv_bias
    qkv_pad = jnp.zeros((batch * seqlen, 3 * dim), jnp.float32).at[indices].set(qkv_ref)
    qkv_pad = qkv_pad.reshape(batch, seqlen, 3, num_heads, head_dim)
    q_r = qkv_pad[:, :, 0].transpose(0, 2, 1, 3)
    k_r = qkv_pad[:, :, 1].transpose(0, 2, 1, 3)
    v_r = qkv_pad[:, :, 2].transpose(0, 2, 1, 3)
    scores = jnp.einsum("bhqd,bhkd->bhqk", q_r, k_r, precision=hp) / math.sqrt(head_dim)
    probs = jax.nn.softmax(scores + bias, axis=-1)
    ctx_r = jnp.einsum("bhqk,bhkd->bhqd", probs, v_r, precision=hp)
    ref = ctx_r.transpose(0, 2, 1, 3).reshape(batch * seqlen, dim)[indices]

    assert out.shape == (total_nnz, dim)
    err = float(jnp.max(jnp.abs(out - ref)))
    # Kernel runs the matmuls / qkv storage in bf16 (f32 accumulation + f32 softmax),
    # so compare against the f32 reference at bf16-appropriate tolerance.
    assert jnp.allclose(out, ref, atol=2e-2, rtol=2e-2), f"max abs err = {err}"

    print("KERNEL_OK")
</pallas_src>

<mosaic_0001>
module attributes {stable_mosaic.version = 11 : i64} {
  func.func @_dense_kernel(%arg0: i32, %arg1: memref<16x32xf32, #tpu.memory_space<vmem>>, %arg2: memref<32x96xbf16, #tpu.memory_space<vmem>>, %arg3: memref<1x96xf32, #tpu.memory_space<vmem>>, %arg4: memref<16x96xbf16, #tpu.memory_space<vmem>>) attributes {dimension_semantics = [#tpu.dimension_semantics<parallel>], iteration_bounds = array<i64: 1>, scalar_prefetch = 0 : i64, scratch_operands = 0 : i64, tpu.core_type = #tpu.core_type<tc>, window_params = [{transform_indices = @transform_0, window_bounds = array<i64: 16, 32>}, {pipeline_mode = #tpu.pipeline_mode<synchronous>, transform_indices = @transform_1, window_bounds = array<i64: 32, 96>}, {pipeline_mode = #tpu.pipeline_mode<synchronous>, transform_indices = @transform_2, window_bounds = array<i64: 1, 96>}, {transform_indices = @transform_3, window_bounds = array<i64: 16, 96>}]} {
    %c0 = arith.constant 0 : index
    %c0_0 = arith.constant 0 : index
    %0 = vector.load %arg1[%c0, %c0_0] : memref<16x32xf32, #tpu.memory_space<vmem>>, vector<16x32xf32>
    %1 = arith.truncf %0 : vector<16x32xf32> to vector<16x32xbf16>
    %c0_1 = arith.constant 0 : index
    %c0_2 = arith.constant 0 : index
    %2 = vector.load %arg2[%c0_1, %c0_2] : memref<32x96xbf16, #tpu.memory_space<vmem>>, vector<32x96xbf16>
    %cst = arith.constant dense<0.000000e+00> : vector<16x96xf32>
    %3 = tpu.matmul %1, %2, %cst {dimension_numbers = #tpu.dot_dimension_numbers<[1], [0], [0], [1], [0, 0, 1, 1], [], []>} : vector<16x32xbf16>, vector<32x96xbf16>, vector<16x96xf32> -> vector<16x96xf32>
    %c0_3 = arith.constant 0 : index
    %c0_4 = arith.constant 0 : index
    %4 = vector.load %arg3[%c0_3, %c0_4] : memref<1x96xf32, #tpu.memory_space<vmem>>, vector<1x96xf32>
    %5 = vector.broadcast %4 : vector<1x96xf32> to vector<16x96xf32>
    %6 = arith.addf %3, %5 : vector<16x96xf32>
    %7 = arith.truncf %6 : vector<16x96xf32> to vector<16x96xbf16>
    %c0_5 = arith.constant 0 : index
    %c0_6 = arith.constant 0 : index
    %8 = vector.load %arg4[%c0_5, %c0_6] : memref<16x96xbf16, #tpu.memory_space<vmem>>, vector<16x96xbf16>
    tpu.vector_store %arg4[%c0_5, %c0_6], %7 {strides = array<i32>} : memref<16x96xbf16, #tpu.memory_space<vmem>>, vector<16x96xbf16>,
    return
  }
  func.func @transform_0(%arg0: i32) -> (i32, i32) {
    %c0_i32 = arith.constant 0 : i32
    %c0_i32_0 = arith.constant 0 : i32
    return %arg0, %c0_i32 : i32, i32
  }
  func.func @transform_1(%arg0: i32) -> (i32, i32) {
    %c0_i32 = arith.constant 0 : i32
    %c0_i32_0 = arith.constant 0 : i32
    %c0_i32_1 = arith.constant 0 : i32
    return %c0_i32, %c0_i32_0 : i32, i32
  }
  func.func @transform_2(%arg0: i32) -> (i32, i32) {
    %c0_i32 = arith.constant 0 : i32
    %c0_i32_0 = arith.constant 0 : i32
    %c0_i32_1 = arith.constant 0 : i32
    return %c0_i32, %c0_i32_0 : i32, i32
  }
  func.func @transform_3(%arg0: i32) -> (i32, i32) {
    %c0_i32 = arith.constant 0 : i32
    %c0_i32_0 = arith.constant 0 : i32
    return %arg0, %c0_i32 : i32, i32
  }
}

</mosaic_0001>

<bundles_post_ra>
// kernel: tpu_custom_call.1
= control target key start
LH: loop header
LB: loop body
LE: loop exit
PB: predicated region body
PF: predicated region fallthrough
CT: control target
= control target key end

     0   :  { %8 = vsyncpa [#allocation3], 0  ;;  %s256_s0 = inlined_call_operand.hbm [shape: f32[16,32], index: 0, kind: input, shape index: {}]   ;;  %s257_s1 = inlined_call_operand.hbm [shape: bf16[32,96], index: 1, kind: input, shape index: {}]   ;;  %s258_s2 = inlined_call_operand.vmem [shape: f32[1,96], index: 2, kind: input, shape index: {}]   ;;  %s259_s3 = inlined_call_operand.hbm [shape: bf16[16,96], index: 3, kind: output, shape index: {}]  }
   0x1   :  { %9 = vsyncpa [#allocation6], 0 }
   0x2   :  { %10 = vsyncpa [#allocation4], 0  ;;  %s15_s14 = sshll.u32 %s256_s0, 4  ;;  %s211_s15 = smov [#allocation2]   ;;  %s16_s14 = int_to_ptr.hbm [resolvable:$true] %s15_s14 }
   0x3   :  { %s17_s16 = sshll.u32 %s211_s15, 4  ;;  %s28_s19 = sshll.u32 %s257_s1, 4  ;;  %s18_s16 = int_to_ptr.vmem [resolvable:$true] %s17_s16  ;;  %s29_s19 = int_to_ptr.hbm [resolvable:$true] %s28_s19 }
   0x4   :  { %s212_s20 = smov 128   ;;  %s213_s21 = smov 8  }
   0x5   :  { %23 = dma.hbm_to_vmem [thread:$0]  %s16_s14, 256, %s18_s16, [#allocation3], %s212_s20, %s212_s20, %s213_s21  }
   0x6   :  { %s214_s22 = smov [#allocation5]   ;;  %s215_s24 = smov 64  }
   0x7   :  { %s30_s23 = sshll.u32 %s214_s22, 4  ;;  %s216_s25 = smov 4   ;;  %s31_s23 = int_to_ptr.vmem [resolvable:$true] %s30_s23 }
   0x8   :  { %36 = dma.hbm_to_vmem [thread:$0]  %s29_s19, 256, %s31_s23, [#allocation6], %s215_s24, %s215_s24, %s216_s25  }
   0x9   :  { %205 = dma.done.wait [#allocation3], 256  }
   0xa   :  { %206 = vsyncadd [#allocation3], 4294967040 }
   0xb   :  { %207 = dma.done.wait [#allocation6], 256  }
   0xc   :  { %208 = vsyncadd [#allocation6], 4294967040  ;;  %v124_v0 = vld [vmem:[#allocation5 + $0x8] sm:$0xff]  ;;  %v123_v1 = vld [vmem:[#allocation5] sm:$0xff]  ;;  %vm71_vm0 = vcmask 261120   ;;  %vm91_vm1 = vcmask 781312  }
   0xd   :  { %81 = vmatpush.bf16.msra.mxu0 %v124_v0  ;;  %v48_v2 = vld [vmem:[#allocation2] sm:$0xff]  ;;  %v49_v3 = vld [vmem:[#allocation2 + $0x8] sm:$0xff]  ;;  %s217_s26 = smov [#allocation7]   ;;  %s100_s30 = sshll.u32 %s259_s3, 4  ;;  %s101_s30 = int_to_ptr.hbm [resolvable:$true] %s100_s30 }
   0xe   :  { %v50_v4 = vpack.c.bf16 %v49_v3, %v48_v2  ;;  %v132_v5 = vld [vmem:[%s258_s2] ss:$0 sm:$0xff]  ;;  %s98_s27 = sshll.u32 %s217_s26, 4  ;;  %s99_s27 = int_to_ptr.vmem [resolvable:$true] %s98_s27 }
  0x11   :  { %82 = vmatpush.bf16.msra.mxu0 %v123_v1 }
  0x14   :  { %122 = vmatmul.msk.bf16.vlgmr.msra.gmra.mxu0 %vm71_vm0, %v50_v4 }
  0x91   :  { %v84_v6 = vpop.f32.mrf.mxu0 }
  0x92   :  { %v85_v7 = vadd.f32 %v132_v5, %v84_v6 }
  0x94   :  { %v89_v8 = vpack.c.bf16 %v85_v7, %v85_v7 }
  0x96   :  { %92 = vst.msk [vmem:[#allocation7] sm:$0xf] %vm91_vm1, %v89_v8 }
  0x99   :  { %v86_v9 = vpop.f32.mrf.mxu0 }
  0x9a   :  { %v87_v10 = vadd.f32 %v132_v5, %v86_v9 }
  0x9c   :  { %v90_v11 = vpack.c.bf16 %v87_v10, %v87_v10 }
  0x9e   :  { %93 = vst.msk [vmem:[#allocation7 + $0x4] sm:$0xf] %vm91_vm1, %v90_v11 }
  0x9f   :  { %106 = dma.vmem_to_hbm [thread:$0]  %s99_s27, 128, %s101_s30, [#allocation4], %s215_s24, %s215_s24, %s216_s25  }
  0xa0   :  { %209 = dma.done.wait [#allocation4], 128  }
  0xa1   :  { %210 = vsyncadd [#allocation4], 4294967168 }
  0xa2   :  { %111 = vsyncpa [#allocation3], 1 }
  0xa3   :  { %112 = vsyncpa [#allocation6], 1 }
  0xa4   :  { %113 = vsyncpa [#allocation4], 1 }

</bundles_post_ra>
